<compile_context>
chip_gen: v6e
topology: v6e:2x2x1
jax: 0.10.0
libtpu: 0.0.40
codegen_flags: <defaults>
</compile_context>

<pallas_src>
import math
import functools
import jax
import jax.numpy as jnp
from jax.experimental import pallas as pl
from jax.experimental.pallas import tpu as pltpu


def _rp_kernel(scale_ref, a_ref, x_ref, o_ref, *, negative_slope, compute_dtype):
    # scale_ref: SMEM (1,)            lambda * sqrt(H)  (hoisted scalar)
    # a_ref:     VMEM (Cb, H, H)      projection matrices for this channel block
    #                                 (resident across the inner batch axis)
    # x_ref:     VMEM (Nb, Cb, H, W)  NCHW block, straight from HBM (no transpose)
    # o_ref:     VMEM (Nb, Cb, H, W)  NCHW output block
    a = a_ref[...]
    if compute_dtype is not None:
        a = a.astype(compute_dtype)
    scale = scale_ref[0]
    nb = x_ref.shape[0]
    # Nb is capped small (<= 8) in the wrapper -> cheap static unroll.
    for n in range(nb):
        x = x_ref[n]
        if compute_dtype is not None:
            x = x.astype(compute_dtype)
        # Batched MXU matmul over the channel block, f32 accumulation.
        y = jnp.einsum("cih,chw->ciw", a, x, preferred_element_type=jnp.float32)
        # Fused scale + leaky_relu on the VPU.
        y = y * scale
        y = jnp.where(y >= 0, y, negative_slope * y)
        o_ref[n] = y.astype(o_ref.dtype)


def _largest_divisor_leq(n, limit):
    limit = max(1, int(limit))
    best = 1
    for d in range(1, n + 1):
        if n % d == 0 and d <= limit:
            best = d
    return best


def cnn_random_projection(x, A, lambda_param, negative_slope=0.2,
                          block_target_bytes=2 << 20, nb_cap=8,
                          compute_dtype=None):
    """x: (N, C, H, W); A: (C, H, H); lambda_param: scalar (may be traced)."""
    N, C, H, W = x.shape
    itemsize = x.dtype.itemsize
    per_plane = H * W * itemsize

    # Block sizing: fold channels first (A residency + one batched matmul),
    # then fold a few batch images if a full-C block is still tiny.
    Cb = _largest_divisor_leq(C, block_target_bytes // per_plane)
    if Cb == C:
        Nb = _largest_divisor_leq(
            N, min(nb_cap, max(1, block_target_bytes // (C * per_plane))))
    else:
        Nb = 1

    grid = (C // Cb, N // Nb)

    # Hoisted scalar scale (scalar*scalar only; A itself is not pre-scaled).
    scale = (jnp.asarray(lambda_param, jnp.float32) * math.sqrt(H)).reshape((1,))

    kernel = functools.partial(_rp_kernel, negative_slope=negative_slope,
                               compute_dtype=compute_dtype)

    cost = pl.CostEstimate(
        flops=2 * N * C * H * H * W,
        transcendentals=0,
        bytes_accessed=int(2 * x.size * itemsize + A.size * A.dtype.itemsize),
    )

    return pl.pallas_call(
        kernel,
        out_shape=jax.ShapeDtypeStruct((N, C, H, W), x.dtype),
        grid=grid,
        in_specs=[
            # lambda * sqrt(H): one SMEM scalar, no tiling.
            pl.BlockSpec(memory_space=pltpu.MemorySpace.SMEM),
            # A[c-block]: constant over the inner batch axis -> stays resident.
            pl.BlockSpec((Cb, H, H), lambda c, n: (c, 0, 0)),
            # x block straight off NCHW (last two dims are full extents).
            pl.BlockSpec((Nb, Cb, H, W), lambda c, n: (n, c, 0, 0)),
        ],
        out_specs=pl.BlockSpec((Nb, Cb, H, W), lambda c, n: (n, c, 0, 0)),
        compiler_params=pltpu.CompilerParams(
            dimension_semantics=("parallel", "parallel")),
        cost_estimate=cost,
    )(scale, A, x)


def _reference(x, A, lambda_param, negative_slope):
    H = x.shape[2]
    ref = jnp.einsum("cih,nchw->nciw", A, x) * lambda_param * math.sqrt(H)
    return jnp.where(ref >= 0, ref, negative_slope * ref)


if __name__ == "__main__":
    key = jax.random.PRNGKey(0)
    k1, k2, k3, k4 = jax.random.split(key, 4)
    lambda_param = 0.3
    negative_slope = 0.2

    # Case 1: small shapes consistent with the module (single-step path:
    # the whole problem fits one (Nb=N, Cb=C) block).
    N, C, H, W = 2, 4, 16, 16
    x = jax.random.normal(k1, (N, C, H, W), dtype=jnp.float32)
    A = jax.random.normal(k2, (C, H, H), dtype=jnp.float32)   # resemble='partial'
    out = jax.block_until_ready(
        cnn_random_projection(x, A, lambda_param, negative_slope))
    ref = _reference(x, A, lambda_param, negative_slope)
    assert out.shape == (N, C, H, W)
    assert jnp.allclose(out, ref, atol=1e-4, rtol=1e-4)

    # Case 2: force a multi-step grid (Cb < C, multiple batch tiles) to
    # exercise the tiled path and A residency across the inner axis.
    N2, C2, H2, W2 = 4, 6, 8, 128
    x2 = jax.random.normal(k3, (N2, C2, H2, W2), dtype=jnp.float32)
    A2 = jax.random.normal(k4, (C2, H2, H2), dtype=jnp.float32)
    out2 = jax.block_until_ready(
        cnn_random_projection(x2, A2, lambda_param, negative_slope,
                              block_target_bytes=8 * 1024))
    ref2 = _reference(x2, A2, lambda_param, negative_slope)
    assert out2.shape == (N2, C2, H2, W2)
    assert jnp.allclose(out2, ref2, atol=1e-4, rtol=1e-4)

    print("KERNEL_OK")
</pallas_src>

<mosaic_0001>
module attributes {stable_mosaic.version = 11 : i64} {
  func.func @_rp_kernel(%arg0: i32, %arg1: i32, %arg2: memref<1xf32, #tpu.memory_space<smem>>, %arg3: memref<4x16x16xf32, #tpu.memory_space<vmem>>, %arg4: memref<2x4x16x16xf32, #tpu.memory_space<vmem>>, %arg5: memref<2x4x16x16xf32, #tpu.memory_space<vmem>>) attributes {dimension_semantics = [#tpu.dimension_semantics<parallel>, #tpu.dimension_semantics<parallel>], iteration_bounds = array<i64: 1, 1>, scalar_prefetch = 0 : i64, scratch_operands = 0 : i64, tpu.core_type = #tpu.core_type<tc>, window_params = [{transform_indices = @transform_0, window_bounds = array<i64: 1>}, {transform_indices = @transform_1, window_bounds = array<i64: 4, 16, 16>}, {transform_indices = @transform_2, window_bounds = array<i64: 2, 4, 16, 16>}, {transform_indices = @transform_3, window_bounds = array<i64: 2, 4, 16, 16>}]} {
    %c0 = arith.constant 0 : index
    %c0_0 = arith.constant 0 : index
    %c0_1 = arith.constant 0 : index
    %0 = vector.load %arg3[%c0, %c0_0, %c0_1] : memref<4x16x16xf32, #tpu.memory_space<vmem>>, vector<4x16x16xf32>
    %c0_2 = arith.constant 0 : index
    %1 = memref.load %arg2[%c0_2] : memref<1xf32, #tpu.memory_space<smem>>
    %c0_3 = arith.constant 0 : index
    %c0_4 = arith.constant 0 : index
    %c0_5 = arith.constant 0 : index
    %c0_6 = arith.constant 0 : index
    %2 = vector.load %arg4[%c0_3, %c0_4, %c0_5, %c0_6] : memref<2x4x16x16xf32, #tpu.memory_space<vmem>>, vector<1x4x16x16xf32>
    %3 = vector.shape_cast %2 : vector<1x4x16x16xf32> to vector<4x16x16xf32>
    "tpu.trace_start"() <{level = 10 : i32, message = "cih,chw->ciw"}> : () -> ()
    %cst = arith.constant dense<0.000000e+00> : vector<4x16x16xf32>
    %4 = tpu.matmul %0, %3, %cst {dimension_numbers = #tpu.dot_dimension_numbers<[2], [1], [1], [2], [0, 0, 0, 1, 1, 2], [0], [0]>} : vector<4x16x16xf32>, vector<4x16x16xf32>, vector<4x16x16xf32> -> vector<4x16x16xf32>
    "tpu.trace_stop"() : () -> ()
    %5 = vector.broadcast %1 : f32 to vector<4x16x16xf32>
    %6 = arith.mulf %4, %5 : vector<4x16x16xf32>
    %cst_7 = arith.constant 0.000000e+00 : f32
    %7 = vector.broadcast %cst_7 : f32 to vector<4x16x16xf32>
    %8 = arith.cmpf oge, %6, %7 : vector<4x16x16xf32>
    %cst_8 = arith.constant 2.000000e-01 : f32
    %9 = vector.broadcast %cst_8 : f32 to vector<4x16x16xf32>
    %10 = arith.mulf %9, %6 : vector<4x16x16xf32>
    %11 = arith.select %8, %6, %10 : vector<4x16x16xi1>, vector<4x16x16xf32>
    %c0_9 = arith.constant 0 : index
    %c0_10 = arith.constant 0 : index
    %c0_11 = arith.constant 0 : index
    %c0_12 = arith.constant 0 : index
    %12 = vector.load %arg5[%c0_9, %c0_10, %c0_11, %c0_12] : memref<2x4x16x16xf32, #tpu.memory_space<vmem>>, vector<1x4x16x16xf32>
    %13 = vector.shape_cast %12 : vector<1x4x16x16xf32> to vector<4x16x16xf32>
    %14 = vector.shape_cast %11 : vector<4x16x16xf32> to vector<1x4x16x16xf32>
    tpu.vector_store %arg5[%c0_9, %c0_10, %c0_11, %c0_12], %14 {strides = array<i32>} : memref<2x4x16x16xf32, #tpu.memory_space<vmem>>, vector<1x4x16x16xf32>,
    %c1 = arith.constant 1 : index
    %c0_13 = arith.constant 0 : index
    %c0_14 = arith.constant 0 : index
    %c0_15 = arith.constant 0 : index
    %15 = vector.load %arg4[%c1, %c0_13, %c0_14, %c0_15] : memref<2x4x16x16xf32, #tpu.memory_space<vmem>>, vector<1x4x16x16xf32>
    %16 = vector.shape_cast %15 : vector<1x4x16x16xf32> to vector<4x16x16xf32>
    "tpu.trace_start"() <{level = 10 : i32, message = "cih,chw->ciw"}> : () -> ()
    %cst_16 = arith.constant dense<0.000000e+00> : vector<4x16x16xf32>
    %17 = tpu.matmul %0, %16, %cst_16 {dimension_numbers = #tpu.dot_dimension_numbers<[2], [1], [1], [2], [0, 0, 0, 1, 1, 2], [0], [0]>} : vector<4x16x16xf32>, vector<4x16x16xf32>, vector<4x16x16xf32> -> vector<4x16x16xf32>
    "tpu.trace_stop"() : () -> ()
    %18 = vector.broadcast %1 : f32 to vector<4x16x16xf32>
    %19 = arith.mulf %17, %18 : vector<4x16x16xf32>
    %cst_17 = arith.constant 0.000000e+00 : f32
    %20 = vector.broadcast %cst_17 : f32 to vector<4x16x16xf32>
    %21 = arith.cmpf oge, %19, %20 : vector<4x16x16xf32>
    %cst_18 = arith.constant 2.000000e-01 : f32
    %22 = vector.broadcast %cst_18 : f32 to vector<4x16x16xf32>
    %23 = arith.mulf %22, %19 : vector<4x16x16xf32>
    %24 = arith.select %21, %19, %23 : vector<4x16x16xi1>, vector<4x16x16xf32>
    %c1_19 = arith.constant 1 : index
    %c0_20 = arith.constant 0 : index
    %c0_21 = arith.constant 0 : index
    %c0_22 = arith.constant 0 : index
    %25 = vector.load %arg5[%c1_19, %c0_20, %c0_21, %c0_22] : memref<2x4x16x16xf32, #tpu.memory_space<vmem>>, vector<1x4x16x16xf32>
    %26 = vector.shape_cast %25 : vector<1x4x16x16xf32> to vector<4x16x16xf32>
    %27 = vector.shape_cast %24 : vector<4x16x16xf32> to vector<1x4x16x16xf32>
    tpu.vector_store %arg5[%c1_19, %c0_20, %c0_21, %c0_22], %27 {strides = array<i32>} : memref<2x4x16x16xf32, #tpu.memory_space<vmem>>, vector<1x4x16x16xf32>,
    return
  }
  func.func @transform_0(%arg0: i32, %arg1: i32) -> i32 {
    %c0_i32 = arith.constant 0 : i32
    %c0_i32_0 = arith.constant 0 : i32
    return %c0_i32 : i32
  }
  func.func @transform_1(%arg0: i32, %arg1: i32) -> (i32, i32, i32) {
    %c0_i32 = arith.constant 0 : i32
    %c0_i32_0 = arith.constant 0 : i32
    %c0_i32_1 = arith.constant 0 : i32
    return %arg0, %c0_i32, %c0_i32_0 : i32, i32, i32
  }
  func.func @transform_2(%arg0: i32, %arg1: i32) -> (i32, i32, i32, i32) {
    %c0_i32 = arith.constant 0 : i32
    %c0_i32_0 = arith.constant 0 : i32
    %c0_i32_1 = arith.constant 0 : i32
    return %arg1, %arg0, %c0_i32, %c0_i32_0 : i32, i32, i32, i32
  }
  func.func @transform_3(%arg0: i32, %arg1: i32) -> (i32, i32, i32, i32) {
    %c0_i32 = arith.constant 0 : i32
    %c0_i32_0 = arith.constant 0 : i32
    %c0_i32_1 = arith.constant 0 : i32
    return %arg1, %arg0, %c0_i32, %c0_i32_0 : i32, i32, i32, i32
  }
}

</mosaic_0001>

<bundles_post_ra>
// kernel: tpu_custom_call.1
= control target key start
LH: loop header
LB: loop body
LE: loop exit
PB: predicated region body
PF: predicated region fallthrough
CT: control target
= control target key end

     0   :  { %9 = vsyncpa [#allocation4], 0  ;;  %s1066_s0 = inlined_call_operand.<no memory space> [shape: f32[1], index: 0, kind: input, shape index: {}]   ;;  %s1067_s1 = inlined_call_operand.hbm [shape: f32[4,16,16], index: 1, kind: input, shape index: {}]   ;;  %s1068_s2 = inlined_call_operand.hbm [shape: f32[2,4,16,16], index: 2, kind: input, shape index: {}]   ;;  %s1069_s3 = inlined_call_operand.hbm [shape: f32[2,4,16,16], index: 3, kind: output, shape index: {}]  }
   0x1   :  { %10 = vsyncpa [#allocation7], 0 }
   0x2   :  { %11 = vsyncpa [#allocation5], 0  ;;  %s970_s12 = smov [#allocation3]  }
   0x3   :  { %s19_s13 = sshll.u32 %s970_s12, 4  ;;  %s20_s13 = int_to_ptr.vmem [resolvable:$true] %s19_s13 }
   0x4   :  { %s912_s14 = scalar_lea.vmem %s20_s13, 1024  ;;  %p917_p1 = scmp.lt.s32.totalorder %s20_s13, %s20_s13 }
   0x5   :  { %p913_p0 = scmp.ne.s32.totalorder %s20_s13, %s912_s14  ;;  %p918_p2 = scmp.lt.s32.totalorder %s912_s14, %s912_s14 }
   0x7   :  { %p919_p3 = por %p918_p2, %p917_p1 }
   0x9   :  { %p920_p4 = pnand %p919_p3, %p913_p0 }
   0xb   :  { %923 = shalt.err (!%p920_p4)
}
   0xc   :  { %s971_s15 = smov 128   ;;  %s972_s16 = smov 8  }
   0xd   :  { %25 = dma.hbm_to_vmem [thread:$0]  %s1067_s1, 1024, %s20_s13, [#allocation4], %s971_s15, %s971_s15, %s972_s16  }
   0xe   :  { %s973_s19 = smov [#allocation6]  }
   0xf   :  { %s31_s20 = sshll.u32 %s973_s19, 4  ;;  %s32_s20 = int_to_ptr.vmem [resolvable:$true] %s31_s20 }
  0x10   :  { %s932_s21 = scalar_lea.vmem %s32_s20, 2048  ;;  %p937_p6 = scmp.lt.s32.totalorder %s32_s20, %s32_s20 }
  0x11   :  { %p933_p5 = scmp.ne.s32.totalorder %s32_s20, %s932_s21  ;;  %p938_p7 = scmp.lt.s32.totalorder %s932_s21, %s932_s21 }
  0x13   :  { %p939_p8 = por %p938_p7, %p937_p6 }
  0x15   :  { %p940_p9 = pnand %p939_p8, %p933_p5 }
  0x17   :  { %943 = shalt.err (!%p940_p9)
}
  0x18   :  { %37 = dma.hbm_to_vmem [thread:$0]  %s1068_s2, 2048, %s32_s20, [#allocation7], %s971_s15, %s971_s15, %s972_s16  }
  0x19   :  { %964 = dma.done.wait [#allocation4], 1024  }
  0x1a   :  { %965 = vsyncadd [#allocation4], 4294966272 }
  0x1b   :  { %966 = dma.done.wait [#allocation7], 2048  }
  0x1c   :  { %967 = vsyncadd [#allocation7], 4294965248  ;;  %v54_v0 = vld [vmem:[#allocation6 + $0x8] sm:$0xff]  ;;  %v56_v1 = vld [vmem:[#allocation6 + $0x18] sm:$0xff]  ;;  %vm61_vm0 = vcmask 130048   ;;  %v1026_v24 = vstv %s1066_s0  ;;  %s974_s0 = smov [#allocation8]  }
  0x1d   :  { %v53_v2 = vld [vmem:[#allocation6] sm:$0xff]  ;;  %843 = vmatprep.subr.mxu0 %v54_v0  ;;  %850 = vmatprep.subr.mxu1 %v56_v1  ;;  %v55_v3 = vld [vmem:[#allocation6 + $0x10] sm:$0xff]  ;;  %v45_v6 = vld [vmem:[#allocation3 + $0x8] sm:$0xff]  ;;  %s782_s24 = sshll.u32 %s974_s0, 4  ;;  %s783_s24 = int_to_ptr.vmem [resolvable:$true] %s782_s24 }
  0x1e   :  { %v44_v4 = vld [vmem:[#allocation3] sm:$0xff]  ;;  %844 = vmatpush3.msra.mxu0 %v54_v0  ;;  %851 = vmatpush3.msra.mxu1 %v56_v1  ;;  %v46_v5 = vld [vmem:[#allocation3 + $0x10] sm:$0xff]  ;;  %v47_v7 = vld [vmem:[#allocation3 + $0x18] sm:$0xff]  ;;  %s944_s25 = scalar_lea.vmem %s783_s24, 2048  ;;  %p949_p11 = scmp.lt.s32.totalorder %s783_s24, %s783_s24 }
  0x1f   :  { %845 = vmatprep.subr.mxu0 %v53_v2  ;;  %852 = vmatprep.subr.mxu1 %v55_v3  ;;  %v58_v8 = vld [vmem:[#allocation6 + $0x28] sm:$0xff]  ;;  %v60_v9 = vld [vmem:[#allocation6 + $0x38] sm:$0xff]  ;;  %v57_v10 = vld [vmem:[#allocation6 + $0x20] sm:$0xff]  ;;  %p945_p10 = scmp.ne.s32.totalorder %s783_s24, %s944_s25  ;;  %p950_p12 = scmp.lt.s32.totalorder %s944_s25, %s944_s25 }
  0x20   :  { %846 = vmatpush3.msra.mxu0 %v53_v2  ;;  %847 = vmatprep.mubr.msk.f32.mxu0 %vm61_vm0, %v44_v4  ;;  %v59_v11 = vld [vmem:[#allocation6 + $0x30] sm:$0xff]  ;;  %v48_v12 = vld [vmem:[#allocation3 + $0x20] sm:$0xff]  ;;  %v49_v14 = vld [vmem:[#allocation3 + $0x28] sm:$0xff] }
  0x21   :  { %853 = vmatpush3.msra.mxu1 %v55_v3  ;;  %854 = vmatprep.mubr.msk.f32.mxu1 %vm61_vm0, %v46_v5  ;;  %v50_v13 = vld [vmem:[#allocation3 + $0x30] sm:$0xff]  ;;  %v51_v15 = vld [vmem:[#allocation3 + $0x38] sm:$0xff]  ;;  %v429_v16 = vld [vmem:[#allocation6 + $0x48] sm:$0xff]  ;;  %p951_p13 = por %p950_p12, %p949_p11 }
  0x22   :  { %848 = vmatmul.mubr.msk.f32.vlgmr.msra.gmra.mxu0 %vm61_vm0, %v45_v6  ;;  %855 = vmatmul.mubr.msk.f32.vlgmr.msra.gmra.mxu1 %vm61_vm0, %v47_v7  ;;  %v431_v17 = vld [vmem:[#allocation6 + $0x58] sm:$0xff]  ;;  %v428_v18 = vld [vmem:[#allocation6 + $0x40] sm:$0xff]  ;;  %v430_v19 = vld [vmem:[#allocation6 + $0x50] sm:$0xff] }
  0x23   :  { %857 = vmatprep.subr.mxu0 %v58_v8  ;;  %864 = vmatprep.subr.mxu1 %v60_v9  ;;  %v433_v20 = vld [vmem:[#allocation6 + $0x68] sm:$0xff]  ;;  %v435_v21 = vld [vmem:[#allocation6 + $0x78] sm:$0xff]  ;;  %v432_v22 = vld [vmem:[#allocation6 + $0x60] sm:$0xff]  ;;  %p952_p0 = pnand %p951_p13, %p945_p10 }
  0x24   :  { %858 = vmatpush3.msra.mxu0 %v58_v8  ;;  %865 = vmatpush3.msra.mxu1 %v60_v9  ;;  %v434_v23 = vld [vmem:[#allocation6 + $0x70] sm:$0xff] }
  0x25   :  { %859 = vmatprep.subr.mxu0 %v57_v10  ;;  %866 = vmatprep.subr.mxu1 %v59_v11 }
  0x26   :  { %860 = vmatpush3.msra.mxu0 %v57_v10  ;;  %861 = vmatprep.mubr.msk.f32.mxu0 %vm61_vm0, %v48_v12 }
  0x27   :  { %867 = vmatpush3.msra.mxu1 %v59_v11  ;;  %868 = vmatprep.mubr.msk.f32.mxu1 %vm61_vm0, %v50_v13 }
  0x28   :  { %862 = vmatmul.mubr.msk.f32.vlgmr.msra.gmra.mxu0 %vm61_vm0, %v49_v14  ;;  %869 = vmatmul.mubr.msk.f32.vlgmr.msra.gmra.mxu1 %vm61_vm0, %v51_v15 }
  0x29   :  { %871 = vmatprep.subr.mxu0 %v429_v16  ;;  %878 = vmatprep.subr.mxu1 %v431_v17 }
  0x2a   :  { %872 = vmatpush3.msra.mxu0 %v429_v16  ;;  %879 = vmatpush3.msra.mxu1 %v431_v17 }
  0x2b   :  { %873 = vmatprep.subr.mxu0 %v428_v18  ;;  %880 = vmatprep.subr.mxu1 %v430_v19 }
  0x2c   :  { %874 = vmatpush3.msra.mxu0 %v428_v18  ;;  %875 = vmatprep.mubr.msk.f32.mxu0 %vm61_vm0, %v44_v4 }
  0x2d   :  { %881 = vmatpush3.msra.mxu1 %v430_v19  ;;  %882 = vmatprep.mubr.msk.f32.mxu1 %vm61_vm0, %v46_v5 }
  0x2e   :  { %876 = vmatmul.mubr.msk.f32.vlgmr.msra.gmra.mxu0 %vm61_vm0, %v45_v6  ;;  %883 = vmatmul.mubr.msk.f32.vlgmr.msra.gmra.mxu1 %vm61_vm0, %v47_v7 }
  0x2f   :  { %885 = vmatprep.subr.mxu0 %v433_v20  ;;  %892 = vmatprep.subr.mxu1 %v435_v21 }
  0x30   :  { %886 = vmatpush3.msra.mxu0 %v433_v20  ;;  %893 = vmatpush3.msra.mxu1 %v435_v21 }
  0x31   :  { %887 = vmatprep.subr.mxu0 %v432_v22  ;;  %894 = vmatprep.subr.mxu1 %v434_v23 }
  0x32   :  { %888 = vmatpush3.msra.mxu0 %v432_v22  ;;  %889 = vmatprep.mubr.msk.f32.mxu0 %vm61_vm0, %v48_v12 }
  0x33   :  { %895 = vmatpush3.msra.mxu1 %v434_v23  ;;  %896 = vmatprep.mubr.msk.f32.mxu1 %vm61_vm0, %v50_v13 }
  0x34   :  { %890 = vmatmul.mubr.msk.f32.vlgmr.msra.gmra.mxu0 %vm61_vm0, %v49_v14  ;;  %897 = vmatmul.mubr.msk.f32.vlgmr.msra.gmra.mxu1 %vm61_vm0, %v51_v15 }
  0xe2   :  { %v849_v25 = vpop.f32.mrf.mxu0  ;;  %v856_v26 = vpop.f32.mrf.mxu1 }
  0xe3   :  { %v388_v27 = vmul.f32 %v849_v25, %v1026_v24  ;;  %v390_v28 = vmul.f32 %v856_v26, %v1026_v24 }
  0xe4   :  { %v134_v29 = vpop.f32.mrf.mxu0  ;;  %v215_v30 = vpop.f32.mrf.mxu1 }
  0xe5   :  { %vm396_vm1 = vcmp.ge.f32.partialorder %v388_v27, 0.0  ;;  %v404_v31 = vmul.f32 0.2, %v388_v27  ;;  %vm398_vm2 = vcmp.ge.f32.partialorder %v390_v28, 0.0  ;;  %v406_v32 = vmul.f32 0.2, %v390_v28 }
  0xe6   :  { %v387_v33 = vmul.f32 %v1026_v24, %v134_v29  ;;  %v389_v34 = vmul.f32 %v1026_v24, %v215_v30 }
  0xe7   :  { %v412_v35 = vsel %vm396_vm1, %v388_v27, %v404_v31  ;;  %v414_v36 = vsel %vm398_vm2, %v390_v28, %v406_v32 }
  0xe8   :  { %420 = vst.msk [vmem:[#allocation8 + $0x8] sm:$0xff] %vm61_vm0, %v412_v35  ;;  %422 = vst.msk [vmem:[#allocation8 + $0x18] sm:$0xff] %vm61_vm0, %v414_v36  ;;  %vm395_vm3 = vcmp.ge.f32.partialorder %v387_v33, 0.0  ;;  %v403_v37 = vmul.f32 0.2, %v387_v33  ;;  %vm397_vm4 = vcmp.ge.f32.partialorder %v389_v34, 0.0  ;;  %v863_v39 = vpop.f32.mrf.mxu0  ;;  %v870_v40 = vpop.f32.mrf.mxu1 }
  0xe9   :  { %v405_v38 = vmul.f32 0.2, %v389_v34  ;;  %v392_v41 = vmul.f32 %v863_v39, %v1026_v24  ;;  %v394_v42 = vmul.f32 %v870_v40, %v1026_v24 }
  0xea   :  { %v411_v43 = vsel %vm395_vm3, %v387_v33, %v403_v37  ;;  %v296_v45 = vpop.f32.mrf.mxu0  ;;  %v377_v46 = vpop.f32.mrf.mxu1 }
  0xeb   :  { %v413_v44 = vsel %vm397_vm4, %v389_v34, %v405_v38  ;;  %419 = vst.msk [vmem:[#allocation8] sm:$0xff] %vm61_vm0, %v411_v43  ;;  %vm400_vm5 = vcmp.ge.f32.partialorder %v392_v41, 0.0  ;;  %v408_v47 = vmul.f32 0.2, %v392_v41  ;;  %vm402_vm6 = vcmp.ge.f32.partialorder %v394_v42, 0.0 }
  0xec   :  { %421 = vst.msk [vmem:[#allocation8 + $0x10] sm:$0xff] %vm61_vm0, %v413_v44  ;;  %v410_v48 = vmul.f32 0.2, %v394_v42  ;;  %v391_v49 = vmul.f32 %v1026_v24, %v296_v45  ;;  %v393_v50 = vmul.f32 %v1026_v24, %v377_v46 }
  0xed   :  { %v416_v51 = vsel %vm400_vm5, %v392_v41, %v408_v47 }
  0xee   :  { %v418_v52 = vsel %vm402_vm6, %v394_v42, %v410_v48  ;;  %424 = vst.msk [vmem:[#allocation8 + $0x28] sm:$0xff] %vm61_vm0, %v416_v51  ;;  %vm399_vm7 = vcmp.ge.f32.partialorder %v391_v49, 0.0  ;;  %v407_v53 = vmul.f32 0.2, %v391_v49  ;;  %vm401_vm8 = vcmp.ge.f32.partialorder %v393_v50, 0.0  ;;  %v877_v55 = vpop.f32.mrf.mxu0  ;;  %v884_v56 = vpop.f32.mrf.mxu1 }
  0xef   :  { %426 = vst.msk [vmem:[#allocation8 + $0x38] sm:$0xff] %vm61_vm0, %v418_v52  ;;  %v409_v54 = vmul.f32 0.2, %v393_v50  ;;  %v737_v57 = vmul.f32 %v877_v55, %v1026_v24  ;;  %v739_v58 = vmul.f32 %v884_v56, %v1026_v24 }
  0xf0   :  { %v415_v59 = vsel %vm399_vm7, %v391_v49, %v407_v53  ;;  %v502_v61 = vpop.f32.mrf.mxu0  ;;  %v577_v62 = vpop.f32.mrf.mxu1 }
  0xf1   :  { %v417_v60 = vsel %vm401_vm8, %v393_v50, %v409_v54  ;;  %423 = vst.msk [vmem:[#allocation8 + $0x20] sm:$0xff] %vm61_vm0, %v415_v59  ;;  %vm745_vm9 = vcmp.ge.f32.partialorder %v737_v57, 0.0  ;;  %v753_v63 = vmul.f32 0.2, %v737_v57  ;;  %vm747_vm10 = vcmp.ge.f32.partialorder %v739_v58, 0.0 }
  0xf2   :  { %425 = vst.msk [vmem:[#allocation8 + $0x30] sm:$0xff] %vm61_vm0, %v417_v60  ;;  %v755_v0 = vmul.f32 0.2, %v739_v58  ;;  %v736_v1 = vmul.f32 %v502_v61, %v1026_v24  ;;  %v738_v2 = vmul.f32 %v577_v62, %v1026_v24 }
  0xf3   :  { %v761_v3 = vsel %vm745_vm9, %v737_v57, %v753_v63 }
  0xf4   :  { %v763_v4 = vsel %vm747_vm10, %v739_v58, %v755_v0  ;;  %770 = vst.msk [vmem:[#allocation8 + $0x48] sm:$0xff] %vm61_vm0, %v761_v3  ;;  %vm744_vm11 = vcmp.ge.f32.partialorder %v736_v1, 0.0  ;;  %v752_v5 = vmul.f32 0.2, %v736_v1  ;;  %vm746_vm12 = vcmp.ge.f32.partialorder %v738_v2, 0.0  ;;  %v891_v7 = vpop.f32.mrf.mxu0  ;;  %v898_v8 = vpop.f32.mrf.mxu1 }
  0xf5   :  { %772 = vst.msk [vmem:[#allocation8 + $0x58] sm:$0xff] %vm61_vm0, %v763_v4  ;;  %v754_v6 = vmul.f32 0.2, %v738_v2  ;;  %v741_v9 = vmul.f32 %v891_v7, %v1026_v24  ;;  %v743_v10 = vmul.f32 %v898_v8, %v1026_v24 }
  0xf6   :  { %v760_v11 = vsel %vm744_vm11, %v736_v1, %v752_v5  ;;  %v652_v13 = vpop.f32.mrf.mxu0  ;;  %v727_v14 = vpop.f32.mrf.mxu1 }
  0xf7   :  { %v762_v12 = vsel %vm746_vm12, %v738_v2, %v754_v6  ;;  %769 = vst.msk [vmem:[#allocation8 + $0x40] sm:$0xff] %vm61_vm0, %v760_v11  ;;  %vm749_vm13 = vcmp.ge.f32.partialorder %v741_v9, 0.0  ;;  %v757_v15 = vmul.f32 0.2, %v741_v9  ;;  %vm751_vm14 = vcmp.ge.f32.partialorder %v743_v10, 0.0 }
  0xf8   :  { %771 = vst.msk [vmem:[#allocation8 + $0x50] sm:$0xff] %vm61_vm0, %v762_v12  ;;  %v759_v16 = vmul.f32 0.2, %v743_v10  ;;  %v740_v17 = vmul.f32 %v652_v13, %v1026_v24  ;;  %v742_v18 = vmul.f32 %v727_v14, %v1026_v24 }
  0xf9   :  { %v765_v19 = vsel %vm749_vm13, %v741_v9, %v757_v15 }
  0xfa   :  { %v767_v20 = vsel %vm751_vm14, %v743_v10, %v759_v16  ;;  %774 = vst.msk [vmem:[#allocation8 + $0x68] sm:$0xff] %vm61_vm0, %v765_v19  ;;  %vm748_vm15 = vcmp.ge.f32.partialorder %v740_v17, 0.0  ;;  %v756_v21 = vmul.f32 0.2, %v740_v17  ;;  %vm750_vm1 = vcmp.ge.f32.partialorder %v742_v18, 0.0 }
  0xfb   :  { %776 = vst.msk [vmem:[#allocation8 + $0x78] sm:$0xff] %vm61_vm0, %v767_v20  ;;  %v758_v22 = vmul.f32 0.2, %v742_v18 }
  0xfc   :  { %v764_v23 = vsel %vm748_vm15, %v740_v17, %v756_v21 }
  0xfd   :  { %v766_v25 = vsel %vm750_vm1, %v742_v18, %v758_v22  ;;  %773 = vst.msk [vmem:[#allocation8 + $0x60] sm:$0xff] %vm61_vm0, %v764_v23 }
  0xfe   :  { %775 = vst.msk [vmem:[#allocation8 + $0x70] sm:$0xff] %vm61_vm0, %v766_v25 }
  0xff   :  { %955 = shalt.err (!%p952_p0)
}
 0x100   :  { %788 = dma.vmem_to_hbm [thread:$0]  %s783_s24, 2048, %s1069_s3, [#allocation5], %s971_s15, %s971_s15, %s972_s16  }
 0x101   :  { %968 = dma.done.wait [#allocation5], 2048  }
 0x102   :  { %969 = vsyncadd [#allocation5], 4294965248 }
 0x103   :  { %792 = vsyncpa [#allocation4], 1 }
 0x104   :  { %793 = vsyncpa [#allocation7], 1 }
 0x105   :  { %794 = vsyncpa [#allocation5], 1 }

</bundles_post_ra>
